<compile_context>
chip_gen: v5e
topology: v5e:2x2
jax: 0.10.0
libtpu: 0.0.40
codegen_flags: <defaults>
</compile_context>

<pallas_src>
import jax
import jax.numpy as jnp
from jax.experimental import pallas as pl
from jax.experimental.pallas import tpu as pltpu


def gcmc_layer_kernel(att_ref, drug_pbt_ref, dis_pb_ref, adj_ref,
                      ci_drug_ref, ci_dis_ref, b_row_ref, b_col_ref,
                      drug_out_ref, dist_out_ref):
    R, B = att_ref.shape                # att in SMEM: (R, B) f32 scalars
    U = b_col_ref.shape[0]              # out_units

    # Rating-invariant slabs (f32; VPU math stays f32 -- see v5e note above).
    drug_slabs = [drug_pbt_ref[b] for b in range(B)]   # each (U, Nd)
    dis_slabs = [dis_pb_ref[b] for b in range(B)]      # each (Ni, U)
    ci_drug = ci_drug_ref[...]          # (Nd, 1)
    ci_dis = ci_dis_ref[...]            # (1, Ni)
    b_row = b_row_ref[...]              # (1, U)
    b_col = b_col_ref[...]              # (U, 1)

    for r in range(R):                  # R is tiny: static unroll, single kernel step
        # Per-rating basis combination: SMEM scalar * slab FMAs (no VMEM att tile,
        # no per-step broadcast of a B-element vector).
        msg_dt = att_ref[r, 0] * drug_slabs[0]          # (U, Nd) = ((cj_d*X_d) @ W_r @ fc_w)^T
        msg_i = att_ref[r, 0] * dis_slabs[0]            # (Ni, U) =  (cj_i*X_i) @ W_r @ fc_w
        for b in range(1, B):
            msg_dt = msg_dt + att_ref[r, b] * drug_slabs[b]
            msg_i = msg_i + att_ref[r, b] * dis_slabs[b]

        adj_r = adj_ref[r]                              # (Nd, Ni) bf16, exact 0/1

        # etype `rev-rating` (disease -> drug): ci_drug * (A_r @ msg_i) + bias
        drug_agg = jnp.dot(adj_r, msg_i.astype(jnp.bfloat16),
                           preferred_element_type=jnp.float32)       # (Nd, U) f32 acc
        drug_out_ref[:, r * U:(r + 1) * U] = ci_drug * drug_agg + b_row

        # etype `rating` (drug -> disease), transposed layout so the big adjacency
        # is never transposed: (A_r^T @ msg_d)^T == msg_d^T @ A_r
        dist_agg = jnp.dot(msg_dt.astype(jnp.bfloat16), adj_r,
                           preferred_element_type=jnp.float32)       # (U, Ni) f32 acc
        dist_out_ref[r * U:(r + 1) * U, :] = ci_dis * dist_agg + b_col


def gcmc_layer_forward(att, basis, drug_feat, dis_feat, adj,
                       cj_drug, ci_drug, cj_dis, ci_dis, fc_w, fc_b):
    R, B = att.shape
    _, F, M = basis.shape
    Nd = drug_feat.shape[0]
    Ni = dis_feat.shape[0]
    U = fc_w.shape[1]

    # --- rating-invariant precompute (wrapper; done once, O(B*F*M*U)+O(N*F*U*B)) ---
    # diag(cj) and the shared fc Linear both commute with the per-rating W_r, so
    # fold them into the basis projection once:  pb_fc[b] = (cj*feat) @ basis[b] @ fc_w.
    # The kernel then only needs the att-weighted sum over the B slabs per rating.
    basis_fc = jnp.einsum('bfm,mu->bfu', basis, fc_w)                      # (B, F, U)
    drug_pb_fc = jnp.einsum('nf,bfu->bnu', cj_drug * drug_feat, basis_fc)  # (B, Nd, U)
    dis_pb_fc = jnp.einsum('nf,bfu->bnu', cj_dis * dis_feat, basis_fc)     # (B, Ni, U)
    # Drug-side messages pre-transposed (layout plumbing in the wrapper) so the
    # disease aggregation is a standard-orientation matmul msg^T @ A_r.
    drug_pb_fct = jnp.transpose(drug_pb_fc, (0, 2, 1))                     # (B, U, Nd)

    # 0/1 adjacency in bf16: exact, half the DMA bytes, native MXU input dtype.
    adj_bf16 = adj.astype(jnp.bfloat16)

    ci_dis_row = ci_dis.reshape(1, Ni)
    b_row = fc_b.reshape(1, U)
    b_col = fc_b.reshape(U, 1)

    vmem = pltpu.MemorySpace.VMEM
    drug_packed, dist_packed = pl.pallas_call(
        gcmc_layer_kernel,
        out_shape=(jax.ShapeDtypeStruct((Nd, R * U), jnp.float32),
                   jax.ShapeDtypeStruct((R * U, Ni), jnp.float32)),
        in_specs=[
            pl.BlockSpec(memory_space=pltpu.MemorySpace.SMEM),   # att (R,B) scalars
            pl.BlockSpec(memory_space=vmem),                     # drug proj, transposed
            pl.BlockSpec(memory_space=vmem),                     # disease proj
            pl.BlockSpec(memory_space=vmem),                     # adjacency (bf16)
            pl.BlockSpec(memory_space=vmem),                     # ci drug (Nd,1)
            pl.BlockSpec(memory_space=vmem),                     # ci disease (1,Ni)
            pl.BlockSpec(memory_space=vmem),                     # fc bias row (1,U)
            pl.BlockSpec(memory_space=vmem),                     # fc bias col (U,1)
        ],
        out_specs=(pl.BlockSpec(memory_space=vmem),
                   pl.BlockSpec(memory_space=vmem)),
    )(att, drug_pb_fct, dis_pb_fc, adj_bf16, ci_drug, ci_dis_row, b_row, b_col)

    # Packed slabs -> (N, R, out_units): matches the DGL 'stack' aggregate (dim=1)
    # followed by the shared Linear.  The disease slab comes back transposed.
    drug_out = drug_packed.reshape(Nd, R, U)
    dis_out = jnp.transpose(dist_packed.reshape(R, U, Ni), (2, 0, 1))
    return drug_out, dis_out


def gcmc_layer_reference(att, basis, drug_feat, dis_feat, adj,
                         cj_drug, ci_drug, cj_dis, ci_dis, fc_w, fc_b):
    R, B = att.shape
    _, F, M = basis.shape
    W = (att @ basis.reshape(B, F * M)).reshape(R, F, M)
    drug_list, dis_list = [], []
    for r in range(R):
        dproj = drug_feat @ W[r]
        iproj = dis_feat @ W[r]
        dis_agg = ci_dis * (adj[r].T @ (cj_drug * dproj))
        drug_agg = ci_drug * (adj[r] @ (cj_dis * iproj))
        drug_list.append(drug_agg @ fc_w + fc_b[None, :])
        dis_list.append(dis_agg @ fc_w + fc_b[None, :])
    return jnp.stack(drug_list, axis=1), jnp.stack(dis_list, axis=1)


if __name__ == "__main__":
    key = jax.random.PRNGKey(0)

    # Small deterministic configuration consistent with GCMCLayer.__init__:
    # rating_vals = [1, 2]  -> R = 2 ;   basis_units = 2
    # msg_units = 48, agg='stack' (//R), ini=True (//3)  ->  M = 8
    # user_in_units = movie_in_units = 32 ; out_units = 16
    R, B = 2, 2
    Nd, Ni = 16, 24
    F = 32
    M = 8
    out_units = 16

    ks = jax.random.split(key, 10)
    att = 0.3 * jax.random.normal(ks[0], (R, B), jnp.float32)
    basis = jax.random.normal(ks[1], (B, F, M), jnp.float32) / jnp.sqrt(F)
    drug_feat = jax.random.normal(ks[2], (Nd, F), jnp.float32)
    dis_feat = jax.random.normal(ks[3], (Ni, F), jnp.float32)
    adj = (jax.random.uniform(ks[4], (R, Nd, Ni)) < 0.3).astype(jnp.float32)
    # per-node normalizers stored as graph.srcdata['cj'] / graph.dstdata['ci']
    cj_drug = jax.random.uniform(ks[5], (Nd, 1), minval=0.1, maxval=1.0)
    ci_drug = jax.random.uniform(ks[6], (Nd, 1), minval=0.1, maxval=1.0)
    cj_dis = jax.random.uniform(ks[7], (Ni, 1), minval=0.1, maxval=1.0)
    ci_dis = jax.random.uniform(ks[8], (Ni, 1), minval=0.1, maxval=1.0)
    # shared ufc == ifc : Linear(M, out_units); pass weight pre-transposed
    fc_weight = jax.random.normal(ks[9], (out_units, M), jnp.float32) / jnp.sqrt(M)
    fc_bias = 0.05 * jnp.arange(out_units, dtype=jnp.float32)
    fc_w_t = fc_weight.T                                            # (M, out)

    drug_out, dis_out = gcmc_layer_forward(
        att, basis, drug_feat, dis_feat, adj,
        cj_drug, ci_drug, cj_dis, ci_dis, fc_w_t, fc_bias)
    jax.block_until_ready((drug_out, dis_out))

    ref_drug, ref_dis = gcmc_layer_reference(
        att, basis, drug_feat, dis_feat, adj,
        cj_drug, ci_drug, cj_dis, ci_dis, fc_w_t, fc_bias)

    assert drug_out.shape == (Nd, R, out_units)
    assert dis_out.shape == (Ni, R, out_units)
    # Messages are rounded to bf16 before aggregation (f32 accumulation), so a
    # slightly looser tolerance than pure f32 is used against the f32 reference.
    assert jnp.allclose(drug_out, ref_drug, rtol=1e-2, atol=1e-2)
    assert jnp.allclose(dis_out, ref_dis, rtol=1e-2, atol=1e-2)

    # TODO(synk): nn.Dropout (training mode) is omitted — kernel implements the
    # deterministic eval-mode forward pass.
    print("KERNEL_OK")
</pallas_src>

<mosaic_0001>
module attributes {stable_mosaic.version = 11 : i64} {
  func.func @gcmc_layer_kernel(%arg0: memref<2x2xf32, #tpu.memory_space<smem>>, %arg1: memref<2x16x16xf32, #tpu.memory_space<vmem>>, %arg2: memref<2x24x16xf32, #tpu.memory_space<vmem>>, %arg3: memref<2x16x24xbf16, #tpu.memory_space<vmem>>, %arg4: memref<16x1xf32, #tpu.memory_space<vmem>>, %arg5: memref<1x24xf32, #tpu.memory_space<vmem>>, %arg6: memref<1x16xf32, #tpu.memory_space<vmem>>, %arg7: memref<16x1xf32, #tpu.memory_space<vmem>>, %arg8: memref<16x32xf32, #tpu.memory_space<vmem>>, %arg9: memref<32x24xf32, #tpu.memory_space<vmem>>) attributes {dimension_semantics = [], scalar_prefetch = 0 : i64, scratch_operands = 0 : i64, tpu.core_type = #tpu.core_type<tc>} {
    %c0 = arith.constant 0 : index
    %c0_0 = arith.constant 0 : index
    %c0_1 = arith.constant 0 : index
    %0 = vector.load %arg1[%c0, %c0_0, %c0_1] : memref<2x16x16xf32, #tpu.memory_space<vmem>>, vector<1x16x16xf32>
    %1 = vector.shape_cast %0 : vector<1x16x16xf32> to vector<16x16xf32>
    %c1 = arith.constant 1 : index
    %c0_2 = arith.constant 0 : index
    %c0_3 = arith.constant 0 : index
    %2 = vector.load %arg1[%c1, %c0_2, %c0_3] : memref<2x16x16xf32, #tpu.memory_space<vmem>>, vector<1x16x16xf32>
    %3 = vector.shape_cast %2 : vector<1x16x16xf32> to vector<16x16xf32>
    %c0_4 = arith.constant 0 : index
    %c0_5 = arith.constant 0 : index
    %c0_6 = arith.constant 0 : index
    %4 = vector.load %arg2[%c0_4, %c0_5, %c0_6] : memref<2x24x16xf32, #tpu.memory_space<vmem>>, vector<1x24x16xf32>
    %5 = vector.shape_cast %4 : vector<1x24x16xf32> to vector<24x16xf32>
    %c1_7 = arith.constant 1 : index
    %c0_8 = arith.constant 0 : index
    %c0_9 = arith.constant 0 : index
    %6 = vector.load %arg2[%c1_7, %c0_8, %c0_9] : memref<2x24x16xf32, #tpu.memory_space<vmem>>, vector<1x24x16xf32>
    %7 = vector.shape_cast %6 : vector<1x24x16xf32> to vector<24x16xf32>
    %c0_10 = arith.constant 0 : index
    %c0_11 = arith.constant 0 : index
    %8 = vector.load %arg4[%c0_10, %c0_11] : memref<16x1xf32, #tpu.memory_space<vmem>>, vector<16x1xf32>
    %c0_12 = arith.constant 0 : index
    %c0_13 = arith.constant 0 : index
    %9 = vector.load %arg5[%c0_12, %c0_13] : memref<1x24xf32, #tpu.memory_space<vmem>>, vector<1x24xf32>
    %c0_14 = arith.constant 0 : index
    %c0_15 = arith.constant 0 : index
    %10 = vector.load %arg6[%c0_14, %c0_15] : memref<1x16xf32, #tpu.memory_space<vmem>>, vector<1x16xf32>
    %c0_16 = arith.constant 0 : index
    %c0_17 = arith.constant 0 : index
    %11 = vector.load %arg7[%c0_16, %c0_17] : memref<16x1xf32, #tpu.memory_space<vmem>>, vector<16x1xf32>
    %c0_18 = arith.constant 0 : index
    %c0_19 = arith.constant 0 : index
    %12 = memref.load %arg0[%c0_18, %c0_19] : memref<2x2xf32, #tpu.memory_space<smem>>
    %13 = vector.broadcast %12 : f32 to vector<16x16xf32>
    %14 = arith.mulf %13, %1 : vector<16x16xf32>
    %c0_20 = arith.constant 0 : index
    %c0_21 = arith.constant 0 : index
    %15 = memref.load %arg0[%c0_20, %c0_21] : memref<2x2xf32, #tpu.memory_space<smem>>
    %16 = vector.broadcast %15 : f32 to vector<24x16xf32>
    %17 = arith.mulf %16, %5 : vector<24x16xf32>
    %c0_22 = arith.constant 0 : index
    %c1_23 = arith.constant 1 : index
    %18 = memref.load %arg0[%c0_22, %c1_23] : memref<2x2xf32, #tpu.memory_space<smem>>
    %19 = vector.broadcast %18 : f32 to vector<16x16xf32>
    %20 = arith.mulf %19, %3 : vector<16x16xf32>
    %21 = arith.addf %14, %20 : vector<16x16xf32>
    %c0_24 = arith.constant 0 : index
    %c1_25 = arith.constant 1 : index
    %22 = memref.load %arg0[%c0_24, %c1_25] : memref<2x2xf32, #tpu.memory_space<smem>>
    %23 = vector.broadcast %22 : f32 to vector<24x16xf32>
    %24 = arith.mulf %23, %7 : vector<24x16xf32>
    %25 = arith.addf %17, %24 : vector<24x16xf32>
    %c0_26 = arith.constant 0 : index
    %c0_27 = arith.constant 0 : index
    %c0_28 = arith.constant 0 : index
    %26 = vector.load %arg3[%c0_26, %c0_27, %c0_28] : memref<2x16x24xbf16, #tpu.memory_space<vmem>>, vector<1x16x24xbf16>
    %27 = vector.shape_cast %26 : vector<1x16x24xbf16> to vector<16x24xbf16>
    %28 = arith.truncf %25 : vector<24x16xf32> to vector<24x16xbf16>
    %cst = arith.constant dense<0.000000e+00> : vector<16x16xf32>
    %29 = tpu.matmul %27, %28, %cst {dimension_numbers = #tpu.dot_dimension_numbers<[1], [0], [0], [1], [0, 0, 1, 1], [], []>} : vector<16x24xbf16>, vector<24x16xbf16>, vector<16x16xf32> -> vector<16x16xf32>
    %30 = vector.broadcast %8 : vector<16x1xf32> to vector<16x16xf32>
    %31 = arith.mulf %30, %29 : vector<16x16xf32>
    %32 = vector.broadcast %10 : vector<1x16xf32> to vector<16x16xf32>
    %33 = arith.addf %31, %32 : vector<16x16xf32>
    %c0_29 = arith.constant 0 : index
    %c0_30 = arith.constant 0 : index
    %34 = vector.load %arg8[%c0_29, %c0_30] : memref<16x32xf32, #tpu.memory_space<vmem>>, vector<16x16xf32>
    tpu.vector_store %arg8[%c0_29, %c0_30], %33 {strides = array<i32>} : memref<16x32xf32, #tpu.memory_space<vmem>>, vector<16x16xf32>,
    %35 = arith.truncf %21 : vector<16x16xf32> to vector<16x16xbf16>
    %cst_31 = arith.constant dense<0.000000e+00> : vector<16x24xf32>
    %36 = tpu.matmul %35, %27, %cst_31 {dimension_numbers = #tpu.dot_dimension_numbers<[1], [0], [0], [1], [0, 0, 1, 1], [], []>} : vector<16x16xbf16>, vector<16x24xbf16>, vector<16x24xf32> -> vector<16x24xf32>
    %37 = vector.broadcast %9 : vector<1x24xf32> to vector<16x24xf32>
    %38 = arith.mulf %37, %36 : vector<16x24xf32>
    %39 = vector.broadcast %11 : vector<16x1xf32> to vector<16x24xf32>
    %40 = arith.addf %38, %39 : vector<16x24xf32>
    %c0_32 = arith.constant 0 : index
    %c0_33 = arith.constant 0 : index
    %41 = vector.load %arg9[%c0_32, %c0_33] : memref<32x24xf32, #tpu.memory_space<vmem>>, vector<16x24xf32>
    tpu.vector_store %arg9[%c0_32, %c0_33], %40 {strides = array<i32>} : memref<32x24xf32, #tpu.memory_space<vmem>>, vector<16x24xf32>,
    %c1_34 = arith.constant 1 : index
    %c0_35 = arith.constant 0 : index
    %42 = memref.load %arg0[%c1_34, %c0_35] : memref<2x2xf32, #tpu.memory_space<smem>>
    %43 = vector.broadcast %42 : f32 to vector<16x16xf32>
    %44 = arith.mulf %43, %1 : vector<16x16xf32>
    %c1_36 = arith.constant 1 : index
    %c0_37 = arith.constant 0 : index
    %45 = memref.load %arg0[%c1_36, %c0_37] : memref<2x2xf32, #tpu.memory_space<smem>>
    %46 = vector.broadcast %45 : f32 to vector<24x16xf32>
    %47 = arith.mulf %46, %5 : vector<24x16xf32>
    %c1_38 = arith.constant 1 : index
    %c1_39 = arith.constant 1 : index
    %48 = memref.load %arg0[%c1_38, %c1_39] : memref<2x2xf32, #tpu.memory_space<smem>>
    %49 = vector.broadcast %48 : f32 to vector<16x16xf32>
    %50 = arith.mulf %49, %3 : vector<16x16xf32>
    %51 = arith.addf %44, %50 : vector<16x16xf32>
    %c1_40 = arith.constant 1 : index
    %c1_41 = arith.constant 1 : index
    %52 = memref.load %arg0[%c1_40, %c1_41] : memref<2x2xf32, #tpu.memory_space<smem>>
    %53 = vector.broadcast %52 : f32 to vector<24x16xf32>
    %54 = arith.mulf %53, %7 : vector<24x16xf32>
    %55 = arith.addf %47, %54 : vector<24x16xf32>
    %c1_42 = arith.constant 1 : index
    %c0_43 = arith.constant 0 : index
    %c0_44 = arith.constant 0 : index
    %56 = vector.load %arg3[%c1_42, %c0_43, %c0_44] : memref<2x16x24xbf16, #tpu.memory_space<vmem>>, vector<1x16x24xbf16>
    %57 = vector.shape_cast %56 : vector<1x16x24xbf16> to vector<16x24xbf16>
    %58 = arith.truncf %55 : vector<24x16xf32> to vector<24x16xbf16>
    %cst_45 = arith.constant dense<0.000000e+00> : vector<16x16xf32>
    %59 = tpu.matmul %57, %58, %cst_45 {dimension_numbers = #tpu.dot_dimension_numbers<[1], [0], [0], [1], [0, 0, 1, 1], [], []>} : vector<16x24xbf16>, vector<24x16xbf16>, vector<16x16xf32> -> vector<16x16xf32>
    %60 = vector.broadcast %8 : vector<16x1xf32> to vector<16x16xf32>
    %61 = arith.mulf %60, %59 : vector<16x16xf32>
    %62 = vector.broadcast %10 : vector<1x16xf32> to vector<16x16xf32>
    %63 = arith.addf %61, %62 : vector<16x16xf32>
    %c0_46 = arith.constant 0 : index
    %c16 = arith.constant 16 : index
    %64 = vector.load %arg8[%c0_46, %c16] : memref<16x32xf32, #tpu.memory_space<vmem>>, vector<16x16xf32>
    tpu.vector_store %arg8[%c0_46, %c16], %63 {strides = array<i32>} : memref<16x32xf32, #tpu.memory_space<vmem>>, vector<16x16xf32>,
    %65 = arith.truncf %51 : vector<16x16xf32> to vector<16x16xbf16>
    %cst_47 = arith.constant dense<0.000000e+00> : vector<16x24xf32>
    %66 = tpu.matmul %65, %57, %cst_47 {dimension_numbers = #tpu.dot_dimension_numbers<[1], [0], [0], [1], [0, 0, 1, 1], [], []>} : vector<16x16xbf16>, vector<16x24xbf16>, vector<16x24xf32> -> vector<16x24xf32>
    %67 = vector.broadcast %9 : vector<1x24xf32> to vector<16x24xf32>
    %68 = arith.mulf %67, %66 : vector<16x24xf32>
    %69 = vector.broadcast %11 : vector<16x1xf32> to vector<16x24xf32>
    %70 = arith.addf %68, %69 : vector<16x24xf32>
    %c16_48 = arith.constant 16 : index
    %c0_49 = arith.constant 0 : index
    %71 = vector.load %arg9[%c16_48, %c0_49] : memref<32x24xf32, #tpu.memory_space<vmem>>, vector<16x24xf32>
    tpu.vector_store %arg9[%c16_48, %c0_49], %70 {strides = array<i32>} : memref<32x24xf32, #tpu.memory_space<vmem>>, vector<16x24xf32>,
    return
  }
}

</mosaic_0001>

<bundles_post_ra>
// kernel: tpu_custom_call.1
= control target key start
LH: loop header
LB: loop body
LE: loop exit
PB: predicated region body
PF: predicated region fallthrough
CT: control target
= control target key end

     0   :  { %15 = vsyncpa [#allocation4], 0  ;;  %s506_s0 = inlined_call_operand.vmem [shape: f32[2,2], index: 0, kind: input, shape index: {}]   ;;  %s507_s1 = inlined_call_operand.vmem [shape: f32[2,16,16], index: 1, kind: input, shape index: {}]   ;;  %s508_s2 = inlined_call_operand.vmem [shape: f32[2,24,16], index: 2, kind: input, shape index: {}]   ;;  %s509_s3 = inlined_call_operand.vmem [shape: bf16[2,16,24], index: 3, kind: input, shape index: {}]   ;;  %s510_s4 = inlined_call_operand.vmem [shape: f32[16,1], index: 4, kind: input, shape index: {}]   ;;  %s511_s5 = inlined_call_operand.vmem [shape: f32[1,24], index: 5, kind: input, shape index: {}]   ;;  %s512_s6 = inlined_call_operand.vmem [shape: f32[1,16], index: 6, kind: input, shape index: {}]   ;;  %s513_s7 = inlined_call_operand.vmem [shape: f32[16,1], index: 7, kind: input, shape index: {}]   ;;  %s514_s8 = inlined_call_operand.hbm [shape: f32[16,32], index: 8, kind: output, shape index: {0}]   ;;  %s515_s9 = inlined_call_operand.vmem [shape: f32[32,24], index: 9, kind: output, shape index: {1}]  }
   0x1   :  { %16 = vsyncpa [#allocation3], 0  ;;  %s22_s11 = sshll.u32 %s506_s0, 4  ;;  %s358_s12 = smov [#allocation2]   ;;  %s23_s11 = int_to_ptr.vmem [resolvable:$true] %s22_s11 }
   0x2   :  { %25 = dma.vmem_to_smem %s23_s11, 32, %s358_s12, [#allocation4]  }
   0x3   :  { %354 = dma.done.wait [#allocation4], 32  }
   0x4   :  { %355 = vsyncadd [#allocation4], 4294967264 }
   0x5   :  { %44 = sfence }
   0x6   :  { %s64_s13 = sld [smem:[#allocation2]]  ;;  %v53_v0 = vld [vmem:[%s508_s2 + $0x10] sm:$0xff]  ;;  %v423_v1 = vld [vmem:[%s509_s3 + $0x8] sm:$0xff]  ;;  %v58_v2 = vld [vmem:[%s510_s4] sm:$0xff]  ;;  %v359_v6 = vmov 0   ;;  %vm96_vm0 = vcmask 1043456  }
   0x7   :  { %s289_s14 = sld [smem:[#allocation2 + $0x1]]  ;;  %v288_v3 = vld [vmem:[%s508_s2 + $0x28] sm:$0xff]  ;;  %v51_v4 = vld [vmem:[%s508_s2] sm:$0xff]  ;;  %314 = vset.pattern.permute.xlu0 %v359_v6  ;;  %315 = vset.pattern.permute.xlu1 %v359_v6  ;;  %v286_v8 = vld [vmem:[%s508_s2 + $0x18] sm:$0xff]  ;;  %vm131_vm1 = vcmask 130048   ;;  %vm92_vm2 = vcmask 195584  }
   0x8   :  { %s296_s17 = sld [smem:[#allocation2 + $0x80]]  ;;  %v437_v5 = vld [vmem:[%s509_s3] sm:$0xff]  ;;  %v52_v7 = vld [vmem:[%s508_s2 + $0x8] sm:$0xff]  ;;  %116 = vperm.xlu0 %314, %v58_v2   ;;  %248 = vmatpush.bf16.msra.mxu3 %v423_v1  ;;  %v284_v27 = vld [vmem:[%s507_s1 + $0x10] sm:$0xff]  ;;  %s360_s29 = smov 16   ;;  %vm233_vm3 = vcmask 261248  }
   0x9   :  { %s297_s23 = sld [smem:[#allocation2 + $0x81]]  ;;  %v62_v9 = vld [vmem:[%s513_s7] sm:$0xff]  ;;  %146 = vmatpush.bf16.msra.mxu1 %v437_v5  ;;  %v47_v21 = vld [vmem:[%s507_s1 + $0x8] sm:$0xff]  ;;  %v285_v32 = vld [vmem:[%s507_s1 + $0x18] sm:$0xff]  ;;  %s361_s11 = smov [#allocation5]  }
   0xa   :  { %v287_v10 = vld [vmem:[%s508_s2 + $0x20] sm:$0xff]  ;;  %160 = vperm.xlu1 %315, %v62_v9   ;;  %v59_v26 = vld [vmem:[%s510_s4 + $0x8] sm:$0xff]  ;;  %s265_s12 = sshll.u32 %s361_s11, 4  ;;  %s267_s16 = sshll.u32 %s514_s8, 4  ;;  %s266_s12 = int_to_ptr.vmem [resolvable:$true] %s265_s12  ;;  %s268_s16 = int_to_ptr.hbm [resolvable:$true] %s267_s16 }
   0xb   :  { %v46_v20 = vld [vmem:[%s507_s1] sm:$0xff]  ;;  %v63_v33 = vld [vmem:[%s513_s7 + $0x8] sm:$0xff]  ;;  %s362_s18 = smov 128   ;;  %s363_s19 = smov 8  }
   0xc   :  { %v65_v11 = vstv %s64_s13  ;;  %v317_v60 = vld [vmem:[%s511_s5] ss:$0 sm:$0xff] }
   0xd   :  { %v70_v12 = vmul.f32 %v65_v11, %v53_v0  ;;  %v72_v13 = vstv %s289_s14  ;;  %v68_v14 = vmul.f32 %v65_v11, %v51_v4  ;;  %v69_v15 = vmul.f32 %v65_v11, %v52_v7  ;;  %v316_v62 = vld [vmem:[%s512_s6] ss:$0 sm:$0xff] }
   0xe   :  { %v79_v16 = vmul.f32 %v288_v3, %v72_v13  ;;  %v173_v17 = vstv %s296_s17  ;;  %v77_v18 = vmul.f32 %v286_v8, %v72_v13  ;;  %v78_v19 = vmul.f32 %v287_v10, %v72_v13 }
   0xf   :  { %v178_v22 = vmul.f32 %v173_v17, %v53_v0  ;;  %v180_v23 = vstv %s297_s23  ;;  %v176_v24 = vmul.f32 %v173_v17, %v51_v4  ;;  %v177_v25 = vmul.f32 %v173_v17, %v52_v7 }
  0x10   :  { %v82_v28 = vadd.f32 %v79_v16, %v70_v12  ;;  %v187_v29 = vmul.f32 %v288_v3, %v180_v23  ;;  %v80_v30 = vadd.f32 %v77_v18, %v68_v14  ;;  %v81_v31 = vadd.f32 %v78_v19, %v69_v15  ;;  %121 = vperm.xlu0 %314, %v59_v26  }
  0x11   :  { %v185_v34 = vmul.f32 %v286_v8, %v180_v23  ;;  %v186_v35 = vmul.f32 %v287_v10, %v180_v23  ;;  %v174_v36 = vmul.f32 %v173_v17, %v46_v20  ;;  %v175_v37 = vmul.f32 %v173_v17, %v47_v21 }
  0x12   :  { %v86_v38 = vpack.c.bf16 %v82_v28, %v82_v28  ;;  %v190_v39 = vadd.f32 %v187_v29, %v178_v22  ;;  %v181_v40 = vmul.f32 %v284_v27, %v180_v23  ;;  %v182_v43 = vmul.f32 %v285_v32, %v180_v23  ;;  %165 = vperm.xlu1 %315, %v63_v33  }
  0x13   :  { %v188_v41 = vadd.f32 %v185_v34, %v176_v24  ;;  %v189_v42 = vadd.f32 %v186_v35, %v177_v25  ;;  %v66_v44 = vmul.f32 %v65_v11, %v46_v20  ;;  %v67_v48 = vmul.f32 %v65_v11, %v47_v21 }
  0x14   :  { %v98_v45 = vsel %vm96_vm0, %v86_v38, 0  ;;  %v195_v46 = vpack.c.bf16 %v190_v39, %v190_v39  ;;  %v183_v47 = vadd.f32 %v181_v40, %v174_v36  ;;  %v85_v49 = vpack.c.bf16 %v81_v31, %v80_v30 }
  0x15   :  { %106 = vmatpush.bf16.msra.mxu0 %v98_v45  ;;  %v184_v50 = vadd.f32 %v182_v43, %v175_v37  ;;  %v73_v51 = vmul.f32 %v284_v27, %v72_v13  ;;  %v74_v52 = vmul.f32 %v285_v32, %v72_v13  ;;  %v194_v54 = vpack.c.bf16 %v189_v42, %v188_v41 }
  0x16   :  { %v205_v53 = vsel %vm96_vm0, %v195_v46, 0 }
  0x17   :  { %213 = vmatpush.bf16.msra.mxu2 %v205_v53  ;;  %v236_v55 = vpack.c.bf16 %v184_v50, %v183_v47  ;;  %v75_v56 = vadd.f32 %v73_v51, %v66_v44  ;;  %v76_v57 = vadd.f32 %v74_v52, %v67_v48 }
  0x19   :  { %107 = vmatpush.bf16.msra.mxu0 %v85_v49  ;;  %305 = vmatmul.msk.bf16.vlgmr.msra.gmra.mxu3 %vm131_vm1, %v236_v55  ;;  %v134_v58 = vpack.c.bf16 %v76_v57, %v75_v56 }
  0x1b   :  { %214 = vmatpush.bf16.msra.mxu2 %v194_v54  ;;  %295 = vmatmul.msk.bf16.vlgmr.msra.gmra.mxu1 %vm131_vm1, %v134_v58 }
  0x1c   :  { %294 = vmatmul.msk.bf16.vlgmr.msra.gmra.mxu0 %vm92_vm2, %v437_v5 }
  0x1e   :  { %304 = vmatmul.msk.bf16.vlgmr.msra.gmra.mxu2 %vm92_vm2, %v423_v1 }
  0x7a   :  { %v117_v59 = vpop.permute.xlu0 %116 }
  0x7c   :  { %v161_v61 = vpop.permute.xlu1 %160 }
  0x82   :  { %v122_v1 = vpop.permute.xlu0 %121 }
  0x84   :  { %v166_v10 = vpop.permute.xlu1 %165 }
  0x98   :  { %v148_v63 = vpop.f32.mrf.mxu1 }
  0x99   :  { %v109_v0 = vpop.f32.mrf.mxu0  ;;  %v156_v2 = vmul.f32 %v317_v60, %v148_v63 }
  0x9a   :  { %v124_v3 = vmul.f32 %v117_v59, %v109_v0 }
  0x9b   :  { %v168_v4 = vadd.f32 %v161_v61, %v156_v2 }
  0x9c   :  { %v129_v6 = vadd.f32 %v316_v62, %v124_v3  ;;  %v250_v5 = vpop.f32.mrf.mxu3 }
  0x9d   :  { %v255_v7 = vmul.f32 %v317_v60, %v250_v5  ;;  %170 = vst.msk [vmem:[%s515_s9] sm:$0xff] %vm92_vm2, %v168_v4 }
  0x9e   :  { %132 = vst.msk [vmem:[#allocation5] sm:$0xff] %vm131_vm1, %v129_v6 }
  0x9f   :  { %v257_v8 = vadd.f32 %v255_v7, %v161_v61 }
  0xa0   :  { %v150_v9 = vpop.f32.mrf.mxu1 }
  0xa1   :  { %v216_v11 = vpop.f32.mrf.mxu2  ;;  %v111_v12 = vpop.f32.mrf.mxu0  ;;  %259 = vst.msk [vmem:[%s515_s9 + $0x10] sm:$0xff] %vm92_vm2, %v257_v8  ;;  %v157_v13 = vmul.f32 %v317_v60, %v150_v9 }
  0xa2   :  { %v221_v14 = vmul.f32 %v216_v11, %v117_v59  ;;  %v125_v15 = vmul.f32 %v122_v1, %v111_v12 }
  0xa3   :  { %v169_v16 = vadd.f32 %v166_v10, %v157_v13 }
  0xa4   :  { %v130_v17 = vadd.f32 %v316_v62, %v125_v15  ;;  %v223_v18 = vadd.f32 %v316_v62, %v221_v14  ;;  %v252_v19 = vpop.f32.mrf.mxu3 }
  0xa5   :  { %v256_v20 = vmul.f32 %v317_v60, %v252_v19  ;;  %171 = vst.msk [vmem:[%s515_s9 + $0x8] sm:$0xff] %vm92_vm2, %v169_v16 }
  0xa6   :  { %133 = vst.msk [vmem:[#allocation5 + $0x8] sm:$0xff] %vm131_vm1, %v130_v17  ;;  %227 = vrot.lane.b32.xlu2 %v223_v18, %s360_s29 }
  0xa7   :  { %v258_v21 = vadd.f32 %v256_v20, %v166_v10 }
  0xa9   :  { %v218_v22 = vpop.f32.mrf.mxu2  ;;  %260 = vst.msk [vmem:[%s515_s9 + $0x18] sm:$0xff] %vm92_vm2, %v258_v21 }
  0xaa   :  { %v222_v23 = vmul.f32 %v218_v22, %v122_v1 }
  0xac   :  { %v224_v24 = vadd.f32 %v316_v62, %v222_v23 }
  0xae   :  { %229 = vrot.lane.b32.xlu2 %v224_v24, %s360_s29 }
 0x100   :  { %v228_v25 = vpop.permute.xlu2 %227 }
 0x101   :  { %234 = vst.msk [vmem:[#allocation5] sm:$0xff] %vm233_vm3, %v228_v25 }
 0x108   :  { %v230_v26 = vpop.permute.xlu2 %229 }
 0x109   :  { %235 = vst.msk [vmem:[#allocation5 + $0x8] sm:$0xff] %vm233_vm3, %v230_v26 }
 0x10a   :  { %273 = dma.vmem_to_hbm [thread:$0]  %s266_s12, 256, %s268_s16, [#allocation3], %s362_s18, %s362_s18, %s363_s19  }
 0x10b   :  { %356 = dma.done.wait [#allocation3], 256  }
 0x10c   :  { %357 = vsyncadd [#allocation3], 4294967040 }
 0x10d   :  { %282 = vsyncpa [#allocation3], 1 }
 0x10e   :  { %283 = vsyncpa [#allocation4], 1 }

</bundles_post_ra>
